<compile_context>
chip_gen: v6e
topology: v6e:2x2x1
jax: 0.10.0
libtpu: 0.0.40
codegen_flags: <defaults>
</compile_context>

<pallas_src>
import jax
import jax.numpy as jnp
from jax.experimental import pallas as pl
from jax.experimental.pallas import tpu as pltpu

EPS_LN = 1e-5


def _ffn_kernel(x_ref, ln_g_ref, ln_b_ref, w1_ref, b1_ref, w2_ref, b2_ref,
                o_ref):
    x = x_ref[...]                                        # (tm, D) f32

    # --- LayerNorm over the feature dim (biased variance, eps=1e-5) ---
    mu = jnp.mean(x, axis=-1, keepdims=True)
    var = jnp.mean((x - mu) ** 2, axis=-1, keepdims=True)
    xn = (x - mu) * jax.lax.rsqrt(var + EPS_LN)
    xn = xn * ln_g_ref[...] + ln_b_ref[...]

    # --- Linear(D -> H): bf16 operands, f32 MXU accumulation ---
    h = jnp.dot(xn.astype(jnp.bfloat16), w1_ref[...],
                preferred_element_type=jnp.float32) + b1_ref[...]

    # --- Swish ---
    h = h * jax.nn.sigmoid(h)

    # TODO(synk): Dropout(p=0.2) is identity in eval mode; training-mode
    # dropout (and its RNG) is not implemented.

    # --- Linear(H -> D) ---
    out = jnp.dot(h.astype(jnp.bfloat16), w2_ref[...],
                  preferred_element_type=jnp.float32) + b2_ref[...]

    o_ref[...] = out.astype(o_ref.dtype)


def _pick_row_tile(m, max_rows):
    """Largest multiple-of-8 divisor of m that is <= max_rows (else m)."""
    if m <= max_rows:
        return m
    tm = max_rows - (max_rows % 8)
    while tm >= 8:
        if m % tm == 0:
            return tm
        tm -= 8
    return m


def feed_forward_module(x, params, *, block_rows=512):
    """x: (B, T, D) f32 -> (B, T, D) f32.  Eval-mode forward pass."""
    B, T, D = x.shape
    H = params["w1"].shape[1]
    M = B * T

    x2 = x.reshape(M, D).astype(jnp.float32)
    tm = _pick_row_tile(M, block_rows)
    grid = (M // tm,)

    # bf16 weights for full-rate MXU; LN params / biases stay f32.
    ln_g = params["ln_g"].astype(jnp.float32)
    ln_b = params["ln_b"].astype(jnp.float32)
    w1 = params["w1"].astype(jnp.bfloat16)
    b1 = params["b1"].astype(jnp.float32)
    w2 = params["w2"].astype(jnp.bfloat16)
    b2 = params["b2"].astype(jnp.float32)

    const = lambda i: (0, 0)
    in_specs = [
        pl.BlockSpec((tm, D), lambda i: (i, 0)),   # x rows
        pl.BlockSpec((1, D), const),               # ln gamma
        pl.BlockSpec((1, D), const),               # ln beta
        pl.BlockSpec((D, H), const),               # w1
        pl.BlockSpec((1, H), const),               # b1
        pl.BlockSpec((H, D), const),               # w2
        pl.BlockSpec((1, D), const),               # b2
    ]
    out_spec = pl.BlockSpec((tm, D), lambda i: (i, 0))

    out = pl.pallas_call(
        _ffn_kernel,
        out_shape=jax.ShapeDtypeStruct((M, D), jnp.float32),
        grid_spec=pltpu.PrefetchScalarGridSpec(
            num_scalar_prefetch=0,
            grid=grid,
            in_specs=in_specs,
            out_specs=out_spec,
        ),
        compiler_params=pltpu.CompilerParams(
            dimension_semantics=("parallel",)),
    )(x2, ln_g, ln_b, w1, b1, w2, b2)
    return out.reshape(B, T, D)


def ffn_reference(x, params):
    """Pure-JAX reference with the same bf16 matmul policy as the kernel."""
    B, T, D = x.shape
    x = x.astype(jnp.float32)
    mu = jnp.mean(x, axis=-1, keepdims=True)
    var = jnp.mean((x - mu) ** 2, axis=-1, keepdims=True)
    xn = (x - mu) * jax.lax.rsqrt(var + EPS_LN)
    xn = xn * params["ln_g"].reshape(1, 1, D) + params["ln_b"].reshape(1, 1, D)
    h = jnp.einsum("btd,dh->bth", xn.astype(jnp.bfloat16),
                   params["w1"].astype(jnp.bfloat16),
                   preferred_element_type=jnp.float32)
    h = h + params["b1"].reshape(1, 1, -1)
    h = h * jax.nn.sigmoid(h)
    out = jnp.einsum("bth,hd->btd", h.astype(jnp.bfloat16),
                     params["w2"].astype(jnp.bfloat16),
                     preferred_element_type=jnp.float32)
    return out + params["b2"].reshape(1, 1, D)


def init_params(key, encoder_dim, expansion_factor=2):
    D = encoder_dim
    H = D * expansion_factor
    ks = jax.random.split(key, 6)

    def rnd(k, shape, scale=0.5):
        return scale * jax.random.normal(k, shape, dtype=jnp.float32)

    return {
        # LayerNorm(D)
        "ln_g": 1.0 + rnd(ks[0], (1, D), 0.1),
        "ln_b": rnd(ks[1], (1, D), 0.1),
        # Linear(D -> H), weight stored transposed as (D, H)
        "w1": rnd(ks[2], (D, H)),
        "b1": rnd(ks[3], (1, H), 0.1),
        # Linear(H -> D), weight stored transposed as (H, D)
        "w2": rnd(ks[4], (H, D)),
        "b2": rnd(ks[5], (1, D), 0.1),
    }


if __name__ == "__main__":
    B, T, D, expansion = 2, 8, 32, 2

    key = jax.random.PRNGKey(0)
    k_x, k_p = jax.random.split(key)
    x = jax.random.normal(k_x, (B, T, D), dtype=jnp.float32)
    params = init_params(k_p, D, expansion)

    # block_rows=8 -> 2 row-tiles for M = B*T = 16, exercising the grid.
    out = feed_forward_module(x, params, block_rows=8)
    out = jax.block_until_ready(out)

    ref = ffn_reference(x, params)
    assert out.shape == (B, T, D), out.shape
    assert bool(jnp.all(jnp.isfinite(out)))
    assert bool(jnp.allclose(out, ref, rtol=2e-2, atol=2e-2)), \
        float(jnp.max(jnp.abs(out - ref)))
    print("KERNEL_OK")
</pallas_src>

<mosaic_0001>
module attributes {stable_mosaic.version = 11 : i64} {
  func.func @_ffn_kernel(%arg0: i32, %arg1: memref<8x32xf32, #tpu.memory_space<vmem>>, %arg2: memref<1x32xf32, #tpu.memory_space<vmem>>, %arg3: memref<1x32xf32, #tpu.memory_space<vmem>>, %arg4: memref<32x64xbf16, #tpu.memory_space<vmem>>, %arg5: memref<1x64xf32, #tpu.memory_space<vmem>>, %arg6: memref<64x32xbf16, #tpu.memory_space<vmem>>, %arg7: memref<1x32xf32, #tpu.memory_space<vmem>>, %arg8: memref<8x32xf32, #tpu.memory_space<vmem>>) attributes {dimension_semantics = [#tpu.dimension_semantics<parallel>], iteration_bounds = array<i64: 2>, scalar_prefetch = 0 : i64, scratch_operands = 0 : i64, tpu.core_type = #tpu.core_type<tc>, window_params = [{transform_indices = @transform_0, window_bounds = array<i64: 8, 32>}, {pipeline_mode = #tpu.pipeline_mode<synchronous>, transform_indices = @transform_1, window_bounds = array<i64: 1, 32>}, {pipeline_mode = #tpu.pipeline_mode<synchronous>, transform_indices = @transform_2, window_bounds = array<i64: 1, 32>}, {pipeline_mode = #tpu.pipeline_mode<synchronous>, transform_indices = @transform_3, window_bounds = array<i64: 32, 64>}, {pipeline_mode = #tpu.pipeline_mode<synchronous>, transform_indices = @transform_4, window_bounds = array<i64: 1, 64>}, {pipeline_mode = #tpu.pipeline_mode<synchronous>, transform_indices = @transform_5, window_bounds = array<i64: 64, 32>}, {pipeline_mode = #tpu.pipeline_mode<synchronous>, transform_indices = @transform_6, window_bounds = array<i64: 1, 32>}, {transform_indices = @transform_7, window_bounds = array<i64: 8, 32>}]} {
    %c0 = arith.constant 0 : index
    %c0_0 = arith.constant 0 : index
    %0 = vector.load %arg1[%c0, %c0_0] : memref<8x32xf32, #tpu.memory_space<vmem>>, vector<8x32xf32>
    %cst = arith.constant dense<0.000000e+00> : vector<8xf32>
    %1 = vector.multi_reduction <add>, %0, %cst [1] : vector<8x32xf32> to vector<8xf32>
    %2 = vector.shape_cast %1 : vector<8xf32> to vector<8x1xf32>
    %cst_1 = arith.constant 3.200000e+01 : f32
    %3 = vector.broadcast %cst_1 : f32 to vector<8x1xf32>
    %4 = arith.divf %2, %3 : vector<8x1xf32>
    %5 = vector.broadcast %4 : vector<8x1xf32> to vector<8x32xf32>
    %6 = arith.subf %0, %5 : vector<8x32xf32>
    %7 = arith.mulf %6, %6 : vector<8x32xf32>
    %cst_2 = arith.constant dense<0.000000e+00> : vector<8xf32>
    %8 = vector.multi_reduction <add>, %7, %cst_2 [1] : vector<8x32xf32> to vector<8xf32>
    %9 = vector.shape_cast %8 : vector<8xf32> to vector<8x1xf32>
    %cst_3 = arith.constant 3.200000e+01 : f32
    %10 = vector.broadcast %cst_3 : f32 to vector<8x1xf32>
    %11 = arith.divf %9, %10 : vector<8x1xf32>
    %12 = vector.broadcast %4 : vector<8x1xf32> to vector<8x32xf32>
    %13 = arith.subf %0, %12 : vector<8x32xf32>
    %cst_4 = arith.constant 9.99999974E-6 : f32
    %14 = vector.broadcast %cst_4 : f32 to vector<8x1xf32>
    %15 = arith.addf %11, %14 : vector<8x1xf32>
    %16 = math.rsqrt %15 : vector<8x1xf32>
    %17 = vector.broadcast %16 : vector<8x1xf32> to vector<8x32xf32>
    %18 = arith.mulf %13, %17 : vector<8x32xf32>
    %c0_5 = arith.constant 0 : index
    %c0_6 = arith.constant 0 : index
    %19 = vector.load %arg2[%c0_5, %c0_6] : memref<1x32xf32, #tpu.memory_space<vmem>>, vector<1x32xf32>
    %20 = vector.broadcast %19 : vector<1x32xf32> to vector<8x32xf32>
    %21 = arith.mulf %18, %20 : vector<8x32xf32>
    %c0_7 = arith.constant 0 : index
    %c0_8 = arith.constant 0 : index
    %22 = vector.load %arg3[%c0_7, %c0_8] : memref<1x32xf32, #tpu.memory_space<vmem>>, vector<1x32xf32>
    %23 = vector.broadcast %22 : vector<1x32xf32> to vector<8x32xf32>
    %24 = arith.addf %21, %23 : vector<8x32xf32>
    %25 = arith.truncf %24 : vector<8x32xf32> to vector<8x32xbf16>
    %c0_9 = arith.constant 0 : index
    %c0_10 = arith.constant 0 : index
    %26 = vector.load %arg4[%c0_9, %c0_10] : memref<32x64xbf16, #tpu.memory_space<vmem>>, vector<32x64xbf16>
    %cst_11 = arith.constant dense<0.000000e+00> : vector<8x64xf32>
    %27 = tpu.matmul %25, %26, %cst_11 {dimension_numbers = #tpu.dot_dimension_numbers<[1], [0], [0], [1], [0, 0, 1, 1], [], []>} : vector<8x32xbf16>, vector<32x64xbf16>, vector<8x64xf32> -> vector<8x64xf32>
    %c0_12 = arith.constant 0 : index
    %c0_13 = arith.constant 0 : index
    %28 = vector.load %arg5[%c0_12, %c0_13] : memref<1x64xf32, #tpu.memory_space<vmem>>, vector<1x64xf32>
    %29 = vector.broadcast %28 : vector<1x64xf32> to vector<8x64xf32>
    %30 = arith.addf %27, %29 : vector<8x64xf32>
    %31 = arith.negf %30 : vector<8x64xf32>
    %32 = math.exp %31 : vector<8x64xf32>
    %cst_14 = arith.constant 1.000000e+00 : f32
    %33 = vector.broadcast %cst_14 : f32 to vector<8x64xf32>
    %34 = arith.addf %33, %32 : vector<8x64xf32>
    %35 = arith.divf %33, %34 : vector<8x64xf32>
    %36 = arith.mulf %30, %35 : vector<8x64xf32>
    %37 = arith.truncf %36 : vector<8x64xf32> to vector<8x64xbf16>
    %c0_15 = arith.constant 0 : index
    %c0_16 = arith.constant 0 : index
    %38 = vector.load %arg6[%c0_15, %c0_16] : memref<64x32xbf16, #tpu.memory_space<vmem>>, vector<64x32xbf16>
    %cst_17 = arith.constant dense<0.000000e+00> : vector<8x32xf32>
    %39 = tpu.matmul %37, %38, %cst_17 {dimension_numbers = #tpu.dot_dimension_numbers<[1], [0], [0], [1], [0, 0, 1, 1], [], []>} : vector<8x64xbf16>, vector<64x32xbf16>, vector<8x32xf32> -> vector<8x32xf32>
    %c0_18 = arith.constant 0 : index
    %c0_19 = arith.constant 0 : index
    %40 = vector.load %arg7[%c0_18, %c0_19] : memref<1x32xf32, #tpu.memory_space<vmem>>, vector<1x32xf32>
    %41 = vector.broadcast %40 : vector<1x32xf32> to vector<8x32xf32>
    %42 = arith.addf %39, %41 : vector<8x32xf32>
    %c0_20 = arith.constant 0 : index
    %c0_21 = arith.constant 0 : index
    %43 = vector.load %arg8[%c0_20, %c0_21] : memref<8x32xf32, #tpu.memory_space<vmem>>, vector<8x32xf32>
    tpu.vector_store %arg8[%c0_20, %c0_21], %42 {strides = array<i32>} : memref<8x32xf32, #tpu.memory_space<vmem>>, vector<8x32xf32>,
    return
  }
  func.func @transform_0(%arg0: i32) -> (i32, i32) {
    %c0_i32 = arith.constant 0 : i32
    %c0_i32_0 = arith.constant 0 : i32
    return %arg0, %c0_i32 : i32, i32
  }
  func.func @transform_1(%arg0: i32) -> (i32, i32) {
    %c0_i32 = arith.constant 0 : i32
    %c0_i32_0 = arith.constant 0 : i32
    %c0_i32_1 = arith.constant 0 : i32
    return %c0_i32, %c0_i32_0 : i32, i32
  }
  func.func @transform_2(%arg0: i32) -> (i32, i32) {
    %c0_i32 = arith.constant 0 : i32
    %c0_i32_0 = arith.constant 0 : i32
    %c0_i32_1 = arith.constant 0 : i32
    return %c0_i32, %c0_i32_0 : i32, i32
  }
  func.func @transform_3(%arg0: i32) -> (i32, i32) {
    %c0_i32 = arith.constant 0 : i32
    %c0_i32_0 = arith.constant 0 : i32
    %c0_i32_1 = arith.constant 0 : i32
    return %c0_i32, %c0_i32_0 : i32, i32
  }
  func.func @transform_4(%arg0: i32) -> (i32, i32) {
    %c0_i32 = arith.constant 0 : i32
    %c0_i32_0 = arith.constant 0 : i32
    %c0_i32_1 = arith.constant 0 : i32
    return %c0_i32, %c0_i32_0 : i32, i32
  }
  func.func @transform_5(%arg0: i32) -> (i32, i32) {
    %c0_i32 = arith.constant 0 : i32
    %c0_i32_0 = arith.constant 0 : i32
    %c0_i32_1 = arith.constant 0 : i32
    return %c0_i32, %c0_i32_0 : i32, i32
  }
  func.func @transform_6(%arg0: i32) -> (i32, i32) {
    %c0_i32 = arith.constant 0 : i32
    %c0_i32_0 = arith.constant 0 : i32
    %c0_i32_1 = arith.constant 0 : i32
    return %c0_i32, %c0_i32_0 : i32, i32
  }
  func.func @transform_7(%arg0: i32) -> (i32, i32) {
    %c0_i32 = arith.constant 0 : i32
    %c0_i32_0 = arith.constant 0 : i32
    return %arg0, %c0_i32 : i32, i32
  }
}

</mosaic_0001>

<bundles_post_ra>
// kernel: tpu_custom_call.1
= control target key start
LH: loop header
LB: loop body
LE: loop exit
PB: predicated region body
PF: predicated region fallthrough
CT: control target
= control target key end

     0   :  { %12 = vsyncpa [#allocation3], 0  ;;  %s881_s0 = inlined_call_operand.vmem [shape: f32[16,32], index: 0, kind: input, shape index: {}]   ;;  %s882_s1 = inlined_call_operand.vmem [shape: f32[1,32], index: 1, kind: input, shape index: {}]   ;;  %s883_s2 = inlined_call_operand.vmem [shape: f32[1,32], index: 2, kind: input, shape index: {}]   ;;  %s884_s3 = inlined_call_operand.vmem [shape: bf16[32,64], index: 3, kind: input, shape index: {}]   ;;  %s885_s4 = inlined_call_operand.vmem [shape: f32[1,64], index: 4, kind: input, shape index: {}]   ;;  %s886_s5 = inlined_call_operand.vmem [shape: bf16[64,32], index: 5, kind: input, shape index: {}]   ;;  %s887_s6 = inlined_call_operand.vmem [shape: f32[1,32], index: 6, kind: input, shape index: {}]   ;;  %s888_s7 = inlined_call_operand.hbm [shape: f32[16,32], index: 7, kind: output, shape index: {}]  }
   0x1   :  { %14 = vsyncpa [#allocation3 + $0x1], 0  ;;  %s748_s24 = smov 0   ;;  %s750_s25 = smov 0  }
   0x2   :  { %s752_s26 = smov 0   ;;  %s754_s27 = smov 0  }
   0x3 LB: > { %s769_s28 = sadd.s32 4294967295, %s703_s27   ;;  %s539_s29 = sadd.s32 4294967294, %s703_s27   ;;  %s703_s27 = sphi %s754_s27, %s894_s27   ;;  %s699_s26 = sphi %s752_s26, %s893_s26   ;;  %s695_s25 = sphi %s750_s25, %s892_s25   ;;  %s691_s24 = sphi %s748_s24, %s891_s24  }
   0x4   : > { %s773_s30 = sadd.s32 1, %s703_s27   ;;  %s179_s8 = sadd.s32 1, %s699_s26 }
   0x5   : > { %s176_s9 = ssub.s32 %s703_s27, %s773_s30  ;;  %p189_p0 = scmp.ne.s32.totalorder %s699_s26, %s695_s25 }
   0x6   : > { %p177_p1 = scmp.eq.s32.totalorder %s176_s9, 0  ;;  %p190_p2 = scmp.eq.s32.totalorder %s769_s28, 1 }
   0x7   : > { %p195_p3 = scmp.ne.s32.totalorder %s695_s25, %s691_s24  ;;  %p196_p4 = scmp.eq.s32.totalorder %s539_s29, 1 }
   0x8   : > { %s784_s10 = scalar_select %p177_p1, %s699_s26, %s179_s8  }
   0x9   : > { %p786_p5 = por %p190_p2, %p189_p0  ;;  %p790_p6 = por %p196_p4, %p195_p3 }
   0xa   : > { %p542_p7 = scmp.ge.s32.totalorder %s703_s27, 1  ;;  %p239_p8 = scmp.lt.s32.totalorder %s703_s27, 3 }
   0xc   : > { %p240_p9 = pnand %p542_p7, %p239_p8 }
   0xd   : > { %p270_p10 = scmp.lt.s32.totalorder (!%p240_p9), %s769_s28, 1  ;;  %s267_s22 = sand.u32 (!%p240_p9), 1, %s695_s25  }
   0xe   : > { %243 = sbr.rel (%p240_p9) target bundleno = 774 (0x306), region = 48  ;;  %s543_s23 = sshll.u32 (!%p240_p9), %s267_s22, 3 }
   0xf   : > { %s559_s9 = sshll.u32 (!%p240_p9), %s769_s28, 7  ;;  %s467_s18 = scalar_lea.sflag (!%p240_p9), [#allocation3], %s267_s22 }
  0x10   : > { %s707_s19 = smov (!%p240_p9), [#allocation2]  }
  0x11   : > { %s647_s20 = sshll.u32 (!%p240_p9), %s707_s19, 4  ;;  %s648_s20 = int_to_ptr.vmem [resolvable:$false] %s647_s20 }
  0x12   : > { %s649_s21 = scalar_lea.vmem (!%p240_p9), %s648_s20, 256 }
  0x13   : > { %s271_s13 = scalar_select %p270_p10, %s769_s28, 1  ;;  %vm276_vm0 = vcmask 261120   ;;  %v631_v7 = vld [vmem:[%s884_s3 + $0x8] sm:$0xff]   ;;  %v705_v8 = vmov 0.0   ;;  %vm706_vm1 = vmmov 0   ;;  %v632_v9 = vld [vmem:[%s884_s3] sm:$0xff]  }
  0x14   : > { %570 = vmatprep.subr.bf16.mxu0 %v705_v8  ;;  %574 = vmatprep.mubr.msk.bf16.mxu0 %vm706_vm1, %v705_v8  ;;  %v545_v14 = vld [vmem:[%s882_s1] ss:$0 sm:$0xff]  ;;  %v633_v20 = vld [vmem:[%s886_s5 + $0x18] sm:$0xff]   ;;  %v634_v21 = vld [vmem:[%s886_s5 + $0x10] sm:$0xff]   ;;  %vm421_vm2 = vcmask 523264  }
  0x15   : > { %s544_s14 = sshll.u32 %s271_s13, 3  ;;  %571 = vmatpush3.bf16.msra.mxu0 %v631_v7  ;;  %578 = vmatprep.subr.bf16.mxu1 %v705_v8  ;;  %v546_v16 = vld [vmem:[%s883_s2] ss:$0 sm:$0xff]  ;;  %v635_v22 = vld [vmem:[%s886_s5 + $0x8] sm:$0xff]   ;;  %s269_s13 = scalar_lea.vmem [#allocation2], %s543_s23 }
  0x16   : > { %s273_s17 = scalar_lea.vmem %s881_s0, %s544_s14  ;;  %572 = vmatprep.subr.bf16.mxu0 %v705_v8  ;;  %586 = vmatprep.mubr.msk.bf16.mxu1 %vm706_vm1, %v705_v8  ;;  %v636_v23 = vld [vmem:[%s886_s5] sm:$0xff]   ;;  %s480_s14 = sshll.u32 %s269_s13, 4  ;;  %s841_s14 = int_to_ptr.vmem [resolvable:$true] %s480_s14 }
  0x17   : > { %v275_v0 = vld [vmem:[%s273_s17] sm:$0xff]  ;;  %579 = vmatpush3.bf16.msra.mxu1 %v633_v20  ;;  %s839_s17 = scalar_lea.hbm %s888_s7, %s559_s9  ;;  %s643_s28 = scalar_lea.vmem %s841_s14, 128 }
  0x18   : > { %v277_v1 = vsel %vm276_vm0, %v275_v0, 0.0  ;;  %580 = vmatprep.subr.bf16.mxu1 %v705_v8  ;;  %v547_v24 = vld [vmem:[%s885_s4] ss:$0 sm:$0xff]  ;;  %p644_p11 = scmp.ne.s32.totalorder %s841_s14, %s643_s28  ;;  %p650_p0 = scmp.lt.s32.totalorder %s841_s14, %s648_s20 }
  0x19   : > { %278 = vadd.xlane.f32.xlu0 %v277_v1  ;;  %573 = vmatpush3.bf16.msra.mxu0 %v632_v9  ;;  %v552_v36 = vld [vmem:[%s887_s6] ss:$0 sm:$0xff]  ;;  %p651_p1 = scmp.lt.s32.totalorder %s649_s21, %s643_s28 }
  0x1a   : > { %p645_p12 = pnand %p644_p11, %p786_p5 }
  0x1b   : > { %581 = vmatpush3.bf16.msra.mxu1 %v634_v21  ;;  %p652_p2 = por %p651_p1, %p650_p0 }
  0x1c   : > { %582 = vmatprep.subr.bf16.mxu1 %v705_v8  ;;  %p646_p13 = pneg %p645_p12 }
  0x1e   : > { %p653_p3 = pnand %p652_p2, %p646_p13 }
  0x1f   : > { %583 = vmatpush3.bf16.msra.mxu1 %v635_v22 }
  0x20   : > { %584 = vmatprep.subr.bf16.mxu1 %v705_v8 }
  0x23   : > { %585 = vmatpush3.bf16.msra.mxu1 %v636_v23 }
  0xa2   : > { %v279_v2 = vpop.xlane.xlu0 %278 }
  0xa3   : > { %v281_v3 = vmul.f32 0.03125, %v279_v2 }
  0xa5   : > { %v282_v4 = vsub.f32 %v275_v0, %v281_v3 }
  0xa7   : > { %v283_v5 = vmul.f32 %v282_v4, %v282_v4 }
  0xa9   : > { %v284_v6 = vsel %vm276_vm0, %v283_v5, 0.0 }
  0xaa   : > { %285 = vadd.xlane.f32.xlu0 %v284_v6 }
 0x133   : > { %v286_v10 = vpop.xlane.xlu0 %285 }
 0x134   : > { %v287_v11 = vmul.f32 0.03125, %v286_v10 }
 0x136   : > { %v288_v12 = vadd.f32 1e-05, %v287_v11 }
 0x138   : > { %637 = vrsqrt.f32 %v288_v12 }
 0x145   : > { %v638_v13 = vpop.eup %637 }
 0x146   : > { %v290_v15 = vmul.f32 %v638_v13, %v282_v4 }
 0x148   : > { %v298_v17 = vmul.f32 %v545_v14, %v290_v15 }
 0x14a   : > { %v306_v18 = vadd.f32 %v546_v16, %v298_v17 }
 0x14c   : > { %v307_v19 = vpack.c.bf16 %v306_v18, %v306_v18 }
 0x14e   : > { %575 = vmatmul.mubr.msk.bf16.vlgmr.msra.gmra.mxu0 %vm276_vm0, %v307_v19 }
 0x20e   : > { %v368_v25 = vpop.f32.mrf.mxu0 }
 0x20f   : > { %v369_v26 = vadd.f32 %v547_v24, %v368_v25 }
 0x210   : > { %v576_v27 = vpop.f32.mrf.mxu0 }
 0x211   : > { %v551_v28 = vmul.f32 -1.442695, %v369_v26 }
 0x212   : > { %v371_v29 = vpop.f32.mrf.mxu0 }
 0x213   : > { %639 = vpow2.f32 %v551_v28 }
 0x214   : > { %v577_v30 = vpop.f32.mrf.mxu0 }
 0x220   : > { %v640_v31 = vpop.eup %639 }
 0x221   : > { %v377_v32 = vadd.f32 1.0, %v640_v31 }
 0x223   : > { %641 = vrcp.f32 %v377_v32 }
 0x230   : > { %v642_v33 = vpop.eup %641 }
 0x231   : > { %v380_v34 = vmul.f32 %v642_v33, %v369_v26 }
 0x233   : > { %v381_v35 = vpack.c.bf16 %v380_v34, %v380_v34 }
 0x235   : > { %587 = vmatmul.mubr.msk.bf16.vlgmr.msra.gmra.mxu1 %vm421_vm2, %v381_v35 }
 0x2f5   : > { %v459_v37 = vpop.f32.mrf.mxu1 }
 0x2f6   : > { %v460_v38 = vadd.f32 %v552_v36, %v459_v37 }
 0x2f7   : > { %v588_v39 = vpop.f32.mrf.mxu1 }
 0x2f8   : > { %465 = vst.msk [vmem:[%s269_s13] sm:$0xff] %vm276_vm0, %v460_v38 }
 0x2f9   : > { %v462_v40 = vpop.f32.mrf.mxu1 }
 0x2fa   : > { %656 = shalt.err (!%p653_p3)
}
 0x2fb   : > { %s657_s23 = scalar_lea.hbm %s839_s17, 128  ;;  %s661_s8 = scalar_lea.hbm %s888_s7, 256 }
 0x2fc   : > { %p658_p4 = scmp.ne.s32.totalorder %s839_s17, %s657_s23  ;;  %p662_p9 = scmp.lt.s32.totalorder %s839_s17, %s888_s7 }
 0x2fd   : > { %p663_p10 = scmp.lt.s32.totalorder %s661_s8, %s657_s23 }
 0x2fe   : > { %p659_p7 = pnand %p658_p4, %p786_p5 }
 0x2ff   : > { %p664_p11 = por %p663_p10, %p662_p9 }
 0x300   : > { %p660_p8 = pneg %p659_p7 }
 0x302   : > { %p665_p12 = pnand %p664_p11, %p660_p8 }
 0x304   : > { %668 = shalt.err (!%p665_p12)
}
 0x305   : > { %590 = dma.vmem_to_hbm [thread:$0]  (%p786_p5), %s841_s14, 128, %s839_s17, %s467_s18   ;;  %v589_v41 = vpop.f32.mrf.mxu1 }
 0x306 PF: > { %p596_p13 = scmp.ge.s32.totalorder %s703_s27, 2  ;;  %s492_s15 = sand.u32 1, %s691_s24  }
 0x307   : > { %s493_s16 = scalar_lea.sflag [#allocation3], %s492_s15 }
 0x308   : > { %p593_p0 = pnand %p596_p13, %p790_p6 }
 0x30a   : > { %p594_p1 = pneg %p593_p0 }
 0x30c   : > { %686 = dma.done.wait (%p594_p1), %s493_s16, 128  }
 0x30d   : > { %688 = vsyncadd (%p594_p1), %s493_s16, 4294967168  ;;  %p17_p2 = scmp.ge.s32.totalorder %s773_s30, 4   ;;  %s891_s24 = smov %s695_s25 }
 0x30e   : > { %s892_s25 = smov %s699_s26  ;;  %s893_s26 = smov %s784_s10 }
 0x30f   : > { %s894_s27 = smov %s773_s30  ;;  %19 = sbr.rel (!%p17_p2) target bundleno = 3 (0x3), region = 83 }
 0x314   :  { %498 = vsyncpa [#allocation3], 1 }
 0x315   :  { %500 = vsyncpa [#allocation3 + $0x1], 1 }

</bundles_post_ra>
